<compile_context>
chip_gen: v5e
topology: v5e:2x2
jax: 0.10.0
libtpu: 0.0.40
codegen_flags: <defaults>
</compile_context>

<pallas_src>
import functools

import jax
import jax.numpy as jnp
from jax import lax
from jax.experimental import pallas as pl
from jax.experimental.pallas import tpu as pltpu


def _round_up(v, m):
    return (v + m - 1) // m * m


def _round_down(v, m):
    return (v // m) * m


def _pointnet_sep_kernel(x_ref, w1_ref, b1_ref, w2_ref, b2_ref, out_ref, acc_ref, *,
                         n_points, tile_n, sub_n, d2_total, mask_points):
    """One grid step: a (tb, tile_n) slab of points -> running max into acc_ref.

    x_ref  : (tb, tile_n, C)    input dtype (cast to bf16 in-kernel)
    w1_ref : (C, pcd*d1)        bf16  block-column fused first conv (W1^T per slice)
    b1_ref : (1, pcd*d1)        f32   tiled first bias
    w2_ref : (pcd*d1, pcd*d2)   bf16  block-diagonal fused second conv (W2^T per slice)
    b2_ref : (1, pcd*d2)        f32   tiled second bias (added after the max)
    out_ref: (tb, pcd*d2)       f32   lane-dense concat over slices
    acc_ref: (tb, pcd*d2)       f32   running max over point chunks
    """
    j = pl.program_id(1)
    tb = x_ref.shape[0]
    c_in = x_ref.shape[2]

    @pl.when(j == 0)
    def _():
        acc_ref[...] = jnp.full(acc_ref.shape, -jnp.inf, acc_ref.dtype)

    w1 = w1_ref[...]
    b1 = b1_ref[...]
    w2 = w2_ref[...]

    m = acc_ref[...]

    def chunk_max(off, rows, m):
        # Static slice of the point axis; rows is a multiple of 8 for all full
        # chunks so the reshapes below are layout no-ops.
        xs = x_ref[:, off:off + rows, :]                          # (tb, rows, C)
        xs = xs.reshape(tb * rows, c_in).astype(jnp.bfloat16)
        h1 = jnp.dot(xs, w1, preferred_element_type=jnp.float32) + b1
        h1 = jnp.maximum(h1, 0.0).astype(jnp.bfloat16)            # ReLU between the convs
        h2 = jnp.dot(h1, w2, preferred_element_type=jnp.float32)  # (tb*rows, pcd*d2) f32
        h2 = h2.reshape(tb, rows, d2_total)
        if mask_points:
            # Points past N (ragged last N-tile) must not pollute the max.
            gidx = j * tile_n + off + lax.broadcasted_iota(jnp.int32, (1, rows, 1), 1)
            h2 = jnp.where(gidx < n_points, h2, -jnp.inf)
        return jnp.maximum(m, jnp.max(h2, axis=1))                # (tb, pcd*d2)

    num_full = tile_n // sub_n
    for c in range(num_full):                                     # static unroll (few chunks)
        m = chunk_max(c * sub_n, sub_n, m)
    rem = tile_n - num_full * sub_n
    if rem:
        m = chunk_max(num_full * sub_n, rem, m)

    acc_ref[...] = m

    @pl.when(j == pl.num_programs(1) - 1)
    def _():
        # bias of the second conv is constant over points -> fold after the max
        out_ref[...] = (m + b2_ref[...]).astype(out_ref.dtype)


def pointnet_encoder_sep(x, w1, b1, w2, b2, input_dim, pcd_num, *,
                         target_rows=8192, sub_rows=1024,
                         x_block_bytes=8 * 1024 * 1024):
    """x: (B, N, C) with C == input_dim * pcd_num. Returns (B, pcd_num * d2) f32."""
    B, N, C = x.shape
    ic = input_dim
    assert C == ic * pcd_num
    d1, d2 = w1.shape[0], w2.shape[0]
    d1_total = pcd_num * d1
    d2_total = pcd_num * d2

    # --- batch tile: >= 8 rows (sublane-aligned, unmasked output stores) and
    # enough MXU rows per grid step to amortize ~0.35 us/step pipeline
    # overhead; keep >= 2 batch tiles so v7x's two TCs both get work. ---
    if B <= 8:
        tb = B
    else:
        tb = 8
        while tb * 2 <= B and tb * N < target_rows and tb < 256:
            tb *= 2
    n_b_tiles = pl.cdiv(B, tb)

    # --- point-dim tiling: full N per step if the (lane-padded) x block fits
    # the VMEM budget, otherwise chunk N across the 'arbitrary' grid axis with
    # a running-max accumulator. Inside each step the matmuls + max run over
    # sub-chunks so the f32 h2 intermediate stays a few MiB (v7x VMEM). ---
    x_it = jnp.dtype(x.dtype).itemsize
    row_bytes = _round_up(C, 128) * x_it              # lane-padded VMEM bytes per point row
    cap_rows = max(8, x_block_bytes // (tb * row_bytes))

    sub_n = max(8, (sub_rows // max(tb, 1)) // 8 * 8)
    if N <= cap_rows:
        tile_n = N                                    # full-dim block: any N allowed
        sub_n = min(sub_n, _round_down(N, 8)) if N >= 8 else N
        mask_points = False
    else:
        sub_n = min(sub_n, _round_down(cap_rows, 8))
        tile_n = min(_round_down(cap_rows, sub_n), 32 * sub_n)
        tile_n = max(tile_n, sub_n)                   # multiple of 8 by construction
        mask_points = (pl.cdiv(N, tile_n) * tile_n != N)
    n_n_tiles = pl.cdiv(N, tile_n)

    # --- host-side fused weights (tiny; mathematically exact re-layout) ---
    f32 = jnp.float32
    w1t = jnp.asarray(w1, f32).T                      # (ic, d1)
    w1f = jnp.zeros((C, d1_total), f32)               # block-column: selects slice p's channels
    for p in range(pcd_num):
        w1f = w1f.at[p * ic:(p + 1) * ic, p * d1:(p + 1) * d1].set(w1t)
    w1f = w1f.astype(jnp.bfloat16)

    w2t = jnp.asarray(w2, f32).T                      # (d1, d2)
    w2bd = jnp.zeros((d1_total, d2_total), f32)       # block-diagonal second conv
    for p in range(pcd_num):
        w2bd = w2bd.at[p * d1:(p + 1) * d1, p * d2:(p + 1) * d2].set(w2t)
    w2bd = w2bd.astype(jnp.bfloat16)

    b1t = jnp.tile(jnp.asarray(b1, f32).reshape(1, d1), (1, pcd_num))
    b2t = jnp.tile(jnp.asarray(b2, f32).reshape(1, d2), (1, pcd_num))

    # --- VMEM budget (double-buffered blocks + in-kernel temporaries) ---
    vmem_est = (
        2 * tb * _round_up(tile_n, 8) * row_bytes                     # x double buffer
        + 2 * _round_up(tb, 8) * _round_up(d2_total, 128) * 4         # out double buffer
        + 2 * _round_up(C, 8) * _round_up(d1_total, 128) * 2          # w1f
        + 2 * _round_up(d1_total, 8) * _round_up(d2_total, 128) * 2   # w2bd
        + _round_up(tb, 8) * _round_up(d2_total, 128) * 4             # acc scratch
        + tb * max(sub_n, 8) * (_round_up(d1_total, 128) * 2          # h1 chunk
                                + _round_up(d2_total, 128) * 4        # h2 chunk
                                + 128 * 2)                            # xs chunk
        + (2 << 20))                                                  # biases + slack
    vmem_limit = int(min(max(vmem_est * 3 // 2, 32 << 20), 64 << 20))

    flops = 2 * B * N * pcd_num * (ic * d1 + d1 * d2)
    bytes_accessed = int(x.size * x_it + B * d2_total * 4
                         + w1f.size * 2 + w2bd.size * 2 + (d1_total + d2_total) * 4)
    cost = pl.CostEstimate(flops=flops, transcendentals=0, bytes_accessed=bytes_accessed)

    kernel = functools.partial(
        _pointnet_sep_kernel, n_points=N, tile_n=tile_n, sub_n=sub_n,
        d2_total=d2_total, mask_points=mask_points)

    out = pl.pallas_call(
        kernel,
        out_shape=jax.ShapeDtypeStruct((B, d2_total), jnp.float32),
        grid_spec=pltpu.PrefetchScalarGridSpec(
            num_scalar_prefetch=0,
            grid=(n_b_tiles, n_n_tiles),
            in_specs=[
                pl.BlockSpec((tb, tile_n, C), lambda i, j: (i, j, 0)),   # x slab (no host copy)
                pl.BlockSpec((C, d1_total), lambda i, j: (0, 0)),
                pl.BlockSpec((1, d1_total), lambda i, j: (0, 0)),
                pl.BlockSpec((d1_total, d2_total), lambda i, j: (0, 0)),
                pl.BlockSpec((1, d2_total), lambda i, j: (0, 0)),
            ],
            out_specs=pl.BlockSpec((tb, d2_total), lambda i, j: (i, 0)),
            scratch_shapes=[pltpu.VMEM((tb, d2_total), jnp.float32)],
        ),
        compiler_params=pltpu.CompilerParams(
            dimension_semantics=("parallel", "arbitrary"),
            vmem_limit_bytes=vmem_limit),
        cost_estimate=cost,
    )(x, w1f, b1t, w2bd, b2t)
    return out


def _reference(x, w1, b1, w2, b2, input_dim, pcd_num):
    """Pure-JAX f32 reference mirroring the PyTorch forward."""
    ic = input_dim
    embds = []
    for i in range(pcd_num):
        y = x[:, :, ic * i:ic * (i + 1)]                            # (B, N, ic)
        h1 = jnp.maximum(jnp.einsum('bnc,dc->bnd', y, w1) + b1, 0.0)
        h2 = jnp.einsum('bnc,dc->bnd', h1, w2) + b2                 # (B, N, d2)
        embds.append(jnp.max(h2, axis=1))                            # (B, d2)
    return jnp.concatenate(embds, axis=-1)


if __name__ == "__main__":
    # Small, module-consistent shapes.
    input_dim = 3          # e.g. xyz points
    pcd_num = 2
    mlp_dims = [64, 128]   # scaled-down version of the default [128, 256]
    B, N = 2, 16
    C = input_dim * pcd_num

    key = jax.random.PRNGKey(0)
    kx, kw1, kb1, kw2, kb2 = jax.random.split(key, 5)

    x = jax.random.normal(kx, (B, N, C), dtype=jnp.float32)

    d1, d2 = mlp_dims
    # Conv1d kernel-size-1 weights: (out, in).
    w1 = 0.1 * jax.random.normal(kw1, (d1, input_dim), dtype=jnp.float32)
    b1 = 0.1 * jax.random.normal(kb1, (d1,), dtype=jnp.float32)
    w2 = 0.1 * jax.random.normal(kw2, (d2, d1), dtype=jnp.float32)
    b2 = 0.1 * jax.random.normal(kb2, (d2,), dtype=jnp.float32)

    out = pointnet_encoder_sep(x, w1, b1, w2, b2, input_dim, pcd_num)
    out = jax.block_until_ready(out)

    ref = _reference(x, w1, b1, w2, b2, input_dim, pcd_num)
    assert out.shape == (B, pcd_num * d2), out.shape
    # Kernel uses bf16 MXU operands with f32 accumulation -> small, bounded
    # deviation from the pure-f32 reference (the weight fusion and the
    # bias-after-max fold are mathematically exact).
    max_err = float(jnp.max(jnp.abs(out - ref)))
    assert max_err < 2e-2, max_err

    print("KERNEL_OK")
</pallas_src>

<mosaic_0001>
module attributes {stable_mosaic.version = 11 : i64} {
  func.func @_pointnet_sep_kernel(%arg0: i32, %arg1: i32, %arg2: memref<2x16x6xf32, #tpu.memory_space<vmem>>, %arg3: memref<6x128xbf16, #tpu.memory_space<vmem>>, %arg4: memref<1x128xf32, #tpu.memory_space<vmem>>, %arg5: memref<128x256xbf16, #tpu.memory_space<vmem>>, %arg6: memref<1x256xf32, #tpu.memory_space<vmem>>, %arg7: memref<2x256xf32, #tpu.memory_space<vmem>>, %arg8: memref<2x256xf32, #tpu.memory_space<vmem>>) attributes {dimension_semantics = [#tpu.dimension_semantics<parallel>, #tpu.dimension_semantics<arbitrary>], iteration_bounds = array<i64: 1, 1>, scalar_prefetch = 0 : i64, scratch_operands = 1 : i64, tpu.core_type = #tpu.core_type<tc>, window_params = [{transform_indices = @transform_0, window_bounds = array<i64: 2, 16, 6>}, {pipeline_mode = #tpu.pipeline_mode<synchronous>, transform_indices = @transform_1, window_bounds = array<i64: 6, 128>}, {pipeline_mode = #tpu.pipeline_mode<synchronous>, transform_indices = @transform_2, window_bounds = array<i64: 1, 128>}, {pipeline_mode = #tpu.pipeline_mode<synchronous>, transform_indices = @transform_3, window_bounds = array<i64: 128, 256>}, {pipeline_mode = #tpu.pipeline_mode<synchronous>, transform_indices = @transform_4, window_bounds = array<i64: 1, 256>}, {transform_indices = @transform_5, window_bounds = array<i64: 2, 256>}]} {
    %c0_i32 = arith.constant 0 : i32
    %0 = arith.cmpi eq, %arg1, %c0_i32 : i32
    %1 = arith.extui %0 : i1 to i32
    %c0_i32_0 = arith.constant 0 : i32
    %2 = arith.cmpi ne, %1, %c0_i32_0 : i32
    scf.if %2 {
      %cst_18 = arith.constant 0xFF800000 : f32
      %24 = vector.broadcast %cst_18 : f32 to vector<2x256xf32>
      %c0_19 = arith.constant 0 : index
      %c0_20 = arith.constant 0 : index
      %25 = vector.load %arg8[%c0_19, %c0_20] : memref<2x256xf32, #tpu.memory_space<vmem>>, vector<2x256xf32>
      tpu.vector_store %arg8[%c0_19, %c0_20], %24 {strides = array<i32>} : memref<2x256xf32, #tpu.memory_space<vmem>>, vector<2x256xf32>,
    } else {
    }
    %c0 = arith.constant 0 : index
    %c0_1 = arith.constant 0 : index
    %3 = vector.load %arg3[%c0, %c0_1] : memref<6x128xbf16, #tpu.memory_space<vmem>>, vector<6x128xbf16>
    %c0_2 = arith.constant 0 : index
    %c0_3 = arith.constant 0 : index
    %4 = vector.load %arg4[%c0_2, %c0_3] : memref<1x128xf32, #tpu.memory_space<vmem>>, vector<1x128xf32>
    %c0_4 = arith.constant 0 : index
    %c0_5 = arith.constant 0 : index
    %5 = vector.load %arg5[%c0_4, %c0_5] : memref<128x256xbf16, #tpu.memory_space<vmem>>, vector<128x256xbf16>
    %c0_6 = arith.constant 0 : index
    %c0_7 = arith.constant 0 : index
    %6 = vector.load %arg8[%c0_6, %c0_7] : memref<2x256xf32, #tpu.memory_space<vmem>>, vector<2x256xf32>
    %c0_8 = arith.constant 0 : index
    %c0_9 = arith.constant 0 : index
    %c0_10 = arith.constant 0 : index
    %7 = vector.load %arg2[%c0_8, %c0_9, %c0_10] : memref<2x16x6xf32, #tpu.memory_space<vmem>>, vector<2x16x6xf32>
    %8 = vector.shape_cast %7 : vector<2x16x6xf32> to vector<32x6xf32>
    %9 = arith.truncf %8 : vector<32x6xf32> to vector<32x6xbf16>
    %cst = arith.constant dense<0.000000e+00> : vector<32x128xf32>
    %10 = tpu.matmul %9, %3, %cst {dimension_numbers = #tpu.dot_dimension_numbers<[1], [0], [0], [1], [0, 0, 1, 1], [], []>} : vector<32x6xbf16>, vector<6x128xbf16>, vector<32x128xf32> -> vector<32x128xf32>
    %11 = vector.broadcast %4 : vector<1x128xf32> to vector<32x128xf32>
    %12 = arith.addf %10, %11 : vector<32x128xf32>
    %cst_11 = arith.constant 0.000000e+00 : f32
    %13 = vector.broadcast %cst_11 : f32 to vector<32x128xf32>
    %14 = arith.maximumf %12, %13 : vector<32x128xf32>
    %15 = arith.truncf %14 : vector<32x128xf32> to vector<32x128xbf16>
    %cst_12 = arith.constant dense<0.000000e+00> : vector<32x256xf32>
    %16 = tpu.matmul %15, %5, %cst_12 {dimension_numbers = #tpu.dot_dimension_numbers<[1], [0], [0], [1], [0, 0, 1, 1], [], []>} : vector<32x128xbf16>, vector<128x256xbf16>, vector<32x256xf32> -> vector<32x256xf32>
    %17 = vector.shape_cast %16 : vector<32x256xf32> to vector<2x16x256xf32>
    %cst_13 = arith.constant dense<0xFF800000> : vector<2x256xf32>
    %18 = vector.multi_reduction <maximumf>, %17, %cst_13 [1] : vector<2x16x256xf32> to vector<2x256xf32>
    %19 = arith.maximumf %6, %18 : vector<2x256xf32>
    %c0_14 = arith.constant 0 : index
    %c0_15 = arith.constant 0 : index
    %20 = vector.load %arg8[%c0_14, %c0_15] : memref<2x256xf32, #tpu.memory_space<vmem>>, vector<2x256xf32>
    tpu.vector_store %arg8[%c0_14, %c0_15], %19 {strides = array<i32>} : memref<2x256xf32, #tpu.memory_space<vmem>>, vector<2x256xf32>,
    %c0_i32_16 = arith.constant 0 : i32
    %21 = arith.cmpi eq, %arg1, %c0_i32_16 : i32
    %22 = arith.extui %21 : i1 to i32
    %c0_i32_17 = arith.constant 0 : i32
    %23 = arith.cmpi ne, %22, %c0_i32_17 : i32
    scf.if %23 {
      %c0_18 = arith.constant 0 : index
      %c0_19 = arith.constant 0 : index
      %24 = vector.load %arg6[%c0_18, %c0_19] : memref<1x256xf32, #tpu.memory_space<vmem>>, vector<1x256xf32>
      %25 = vector.broadcast %24 : vector<1x256xf32> to vector<2x256xf32>
      %26 = arith.addf %19, %25 : vector<2x256xf32>
      %c0_20 = arith.constant 0 : index
      %c0_21 = arith.constant 0 : index
      %27 = vector.load %arg7[%c0_20, %c0_21] : memref<2x256xf32, #tpu.memory_space<vmem>>, vector<2x256xf32>
      tpu.vector_store %arg7[%c0_20, %c0_21], %26 {strides = array<i32>} : memref<2x256xf32, #tpu.memory_space<vmem>>, vector<2x256xf32>,
    } else {
    }
    return
  }
  func.func @transform_0(%arg0: i32, %arg1: i32) -> (i32, i32, i32) {
    %c0_i32 = arith.constant 0 : i32
    %c0_i32_0 = arith.constant 0 : i32
    return %arg0, %arg1, %c0_i32 : i32, i32, i32
  }
  func.func @transform_1(%arg0: i32, %arg1: i32) -> (i32, i32) {
    %c0_i32 = arith.constant 0 : i32
    %c0_i32_0 = arith.constant 0 : i32
    %c0_i32_1 = arith.constant 0 : i32
    return %c0_i32, %c0_i32_0 : i32, i32
  }
  func.func @transform_2(%arg0: i32, %arg1: i32) -> (i32, i32) {
    %c0_i32 = arith.constant 0 : i32
    %c0_i32_0 = arith.constant 0 : i32
    %c0_i32_1 = arith.constant 0 : i32
    return %c0_i32, %c0_i32_0 : i32, i32
  }
  func.func @transform_3(%arg0: i32, %arg1: i32) -> (i32, i32) {
    %c0_i32 = arith.constant 0 : i32
    %c0_i32_0 = arith.constant 0 : i32
    %c0_i32_1 = arith.constant 0 : i32
    return %c0_i32, %c0_i32_0 : i32, i32
  }
  func.func @transform_4(%arg0: i32, %arg1: i32) -> (i32, i32) {
    %c0_i32 = arith.constant 0 : i32
    %c0_i32_0 = arith.constant 0 : i32
    %c0_i32_1 = arith.constant 0 : i32
    return %c0_i32, %c0_i32_0 : i32, i32
  }
  func.func @transform_5(%arg0: i32, %arg1: i32) -> (i32, i32) {
    %c0_i32 = arith.constant 0 : i32
    %c0_i32_0 = arith.constant 0 : i32
    return %arg0, %c0_i32 : i32, i32
  }
}

</mosaic_0001>

<bundles_post_ra>
// kernel: tpu_custom_call.1
= control target key start
LH: loop header
LB: loop body
LE: loop exit
PB: predicated region body
PF: predicated region fallthrough
CT: control target
= control target key end

     0   :  { %10 = vsyncpa [#allocation4], 0  ;;  %s530_s0 = inlined_call_operand.vmem [shape: f32[2,16,6], index: 0, kind: input, shape index: {}]   ;;  %s531_s1 = inlined_call_operand.vmem [shape: bf16[6,128], index: 1, kind: input, shape index: {}]   ;;  %s532_s2 = inlined_call_operand.vmem [shape: f32[1,128], index: 2, kind: input, shape index: {}]   ;;  %s533_s3 = inlined_call_operand.hbm [shape: bf16[128,256], index: 3, kind: input, shape index: {}]   ;;  %s534_s4 = inlined_call_operand.vmem [shape: f32[1,256], index: 4, kind: input, shape index: {}]   ;;  %s535_s5 = inlined_call_operand.hbm [shape: f32[2,256], index: 5, kind: output, shape index: {}]  }
   0x1   :  { %11 = vsyncpa [#allocation5], 0  ;;  %s22_s20 = sshll.u32 %s533_s3, 4  ;;  %s463_s21 = smov [#allocation3]   ;;  %s23_s20 = int_to_ptr.hbm [resolvable:$true] %s22_s20 }
   0x2   :  { %s24_s22 = sshll.u32 %s463_s21, 4  ;;  %s464_s23 = smov 128   ;;  %s25_s22 = int_to_ptr.vmem [resolvable:$true] %s24_s22 }
   0x3   :  { %s465_s24 = smov 8  }
   0x4   :  { %30 = dma.hbm_to_vmem [thread:$0]  %s23_s20, 2048, %s25_s22, [#allocation4], %s464_s23, %s464_s23, %s465_s24  }
   0x5   :  { %459 = dma.done.wait [#allocation4], 2048  }
   0x6   :  { %460 = vsyncadd [#allocation4], 4294965248  ;;  %vm78_vm0 = vcmask 1042432   ;;  %v43_v0 = vld [vmem:[%s531_s1] sm:$0x7]  ;;  %v63_v2 = vld [vmem:[%s530_s0 + $0x8] sm:$0xff] }
   0x7   :  { %v62_v1 = vld [vmem:[%s530_s0] sm:$0xff]  ;;  %v80_v3 = vsel %vm78_vm0, %v43_v0, 0  ;;  %vm71_vm1 = vcmask 48128   ;;  %v367_v5 = vld [vmem:[#allocation3 + $0x70] sm:$0xf]  ;;  %v65_v29 = vld [vmem:[%s530_s0 + $0x18] sm:$0xff] }
   0x8   :  { %v66_v4 = vpack.c.bf16 %v63_v2, %v62_v1  ;;  %89 = vmatpush.bf16.msra.mxu0 %v80_v3  ;;  %v388_v6 = vld [vmem:[#allocation3 + $0x74] sm:$0xf0]  ;;  %v387_v7 = vld [vmem:[#allocation3 + $0x74] sm:$0xf]  ;;  %v369_v8 = vld [vmem:[#allocation3 + $0x78] sm:$0xf0] }
   0x9   :  { %v368_v9 = vor.u32 %v388_v6, %v367_v5  ;;  %v372_v10 = vor.u32 %v387_v7, %v369_v8  ;;  %v359_v11 = vld [vmem:[#allocation3 + $0x60] sm:$0xf]  ;;  %v386_v12 = vld [vmem:[#allocation3 + $0x64] sm:$0xf0]  ;;  %v385_v13 = vld [vmem:[#allocation3 + $0x64] sm:$0xf] }
   0xa   :  { %v361_v14 = vld [vmem:[#allocation3 + $0x68] sm:$0xf0]  ;;  %v360_v15 = vor.u32 %v386_v12, %v359_v11  ;;  %v351_v17 = vld [vmem:[#allocation3 + $0x50] sm:$0xf]  ;;  %v384_v18 = vld [vmem:[#allocation3 + $0x54] sm:$0xf0] }
   0xb   :  { %307 = vmatmul.msk.bf16.vlgmr.msra.gmra.mxu0 %vm71_vm1, %v66_v4  ;;  %187 = vmatpush.bf16.msra.mxu1 %v368_v9  ;;  %v364_v16 = vor.u32 %v385_v13, %v361_v14  ;;  %v383_v19 = vld [vmem:[#allocation3 + $0x54] sm:$0xf]  ;;  %v353_v20 = vld [vmem:[#allocation3 + $0x58] sm:$0xf0]  ;;  %v352_v21 = vor.u32 %v384_v18, %v351_v17  ;;  %v343_v23 = vld [vmem:[#allocation3 + $0x40] sm:$0xf] }
   0xc   :  { %206 = vmatpush.bf16.msrb.mxu0 %v372_v10  ;;  %389 = vmatpush.bf16.msra.mxu3 %v368_v9  ;;  %v356_v22 = vor.u32 %v383_v19, %v353_v20  ;;  %v382_v24 = vld [vmem:[#allocation3 + $0x44] sm:$0xf0]  ;;  %v381_v25 = vld [vmem:[#allocation3 + $0x44] sm:$0xf]  ;;  %v345_v26 = vld [vmem:[#allocation3 + $0x48] sm:$0xf0] }
   0xd   :  { %397 = vmatpush.bf16.msra.mxu2 %v372_v10  ;;  %v344_v27 = vor.u32 %v382_v24, %v343_v23  ;;  %v64_v28 = vld [vmem:[%s530_s0 + $0x10] sm:$0xff]  ;;  %v348_v30 = vor.u32 %v381_v25, %v345_v26  ;;  %v380_v33 = vld [vmem:[#allocation3 + $0x34] sm:$0xf0]  ;;  %v379_v34 = vld [vmem:[#allocation3 + $0x34] sm:$0xf]  ;;  %v466_v10 = vmov -inf  }
   0xe   :  { %v67_v31 = vpack.c.bf16 %v65_v29, %v64_v28  ;;  %v335_v32 = vld [vmem:[#allocation3 + $0x30] sm:$0xf]  ;;  %v337_v36 = vld [vmem:[#allocation3 + $0x38] sm:$0xf0]  ;;  %v327_v38 = vld [vmem:[#allocation3 + $0x20] sm:$0xf] }
   0xf   :  { %188 = vmatpush.bf16.msra.mxu1 %v360_v15  ;;  %v336_v35 = vor.u32 %v380_v33, %v335_v32  ;;  %v340_v37 = vor.u32 %v379_v34, %v337_v36  ;;  %v378_v39 = vld [vmem:[#allocation3 + $0x24] sm:$0xf0]  ;;  %v377_v40 = vld [vmem:[#allocation3 + $0x24] sm:$0xf]  ;;  %v329_v42 = vld [vmem:[#allocation3 + $0x28] sm:$0xf0] }
  0x10   :  { %207 = vmatpush.bf16.msrb.mxu0 %v364_v16  ;;  %390 = vmatpush.bf16.msra.mxu3 %v360_v15  ;;  %v328_v41 = vor.u32 %v378_v39, %v327_v38  ;;  %v332_v43 = vor.u32 %v377_v40, %v329_v42  ;;  %v319_v44 = vld [vmem:[#allocation3 + $0x10] sm:$0xf]  ;;  %v376_v45 = vld [vmem:[#allocation3 + $0x14] sm:$0xf0]  ;;  %v375_v46 = vld [vmem:[#allocation3 + $0x14] sm:$0xf] }
  0x11   :  { %398 = vmatpush.bf16.msra.mxu2 %v364_v16  ;;  %v320_v47 = vor.u32 %v376_v45, %v319_v44  ;;  %v321_v48 = vld [vmem:[#allocation3 + $0x18] sm:$0xf0]  ;;  %v311_v50 = vld [vmem:[#allocation3] sm:$0xf]  ;;  %v374_v51 = vld [vmem:[#allocation3 + $0x4] sm:$0xf0] }
  0x12   :  { %v324_v49 = vor.u32 %v375_v46, %v321_v48  ;;  %v373_v52 = vld [vmem:[#allocation3 + $0x4] sm:$0xf]  ;;  %v312_v53 = vor.u32 %v374_v51, %v311_v50  ;;  %v313_v54 = vld [vmem:[#allocation3 + $0x8] sm:$0xf0]  ;;  %v410_v57 = vld [vmem:[%s532_s2] ss:$0 sm:$0xff] }
  0x13   :  { %189 = vmatpush.bf16.msra.mxu1 %v352_v21  ;;  %v316_v55 = vor.u32 %v373_v52, %v313_v54  ;;  %42 = vst [vmem:[#allocation2] sm:$0xf] %v466_v10  ;;  %v281_v40 = vld [vmem:[%s534_s4] sm:$0x3]  ;;  %vm259_vm2 = vcmask 1041408   ;;  %vm267_vm3 = vcmask 1041409  }
  0x14   :  { %208 = vmatpush.bf16.msrb.mxu0 %v356_v22  ;;  %391 = vmatpush.bf16.msra.mxu3 %v352_v21  ;;  %v284_v46 = vperm.slane %v281_v40, 1  ;;  %vm269_vm4 = vcmask 1043459   ;;  %vm271_vm5 = vcmask 1045509   ;;  %v283_v51 = vperm.slane %v281_v40, 0  ;;  %s467_s4 = smov [#allocation6]   ;;  %s297_s13 = sshll.u32 %s535_s5, 4  ;;  %s298_s13 = int_to_ptr.hbm [resolvable:$true] %s297_s13 }
  0x15   :  { %399 = vmatpush.bf16.msra.mxu2 %v356_v22  ;;  %vm273_vm6 = vcmask 1047559   ;;  %s295_s10 = sshll.u32 %s467_s4, 4  ;;  %s296_s10 = int_to_ptr.vmem [resolvable:$true] %s295_s10 }
  0x16   :  { %v285_v52 = vrot.slane %v284_v46, 6 }
  0x17   :  { %190 = vmatpush.bf16.msra.mxu1 %v344_v27 }
  0x18   :  { %209 = vmatpush.bf16.msrb.mxu0 %v348_v30  ;;  %392 = vmatpush.bf16.msra.mxu3 %v344_v27 }
  0x19   :  { %400 = vmatpush.bf16.msra.mxu2 %v348_v30 }
  0x1a   :  { %v61_v54 = vld [vmem:[#allocation2] sm:$0xf] }
  0x1b   :  { %308 = vmatmul.msk.bf16.gmra.mxu0 %vm71_vm1, %v67_v31  ;;  %191 = vmatpush.bf16.msra.mxu1 %v336_v35 }
  0x1c   :  { %393 = vmatpush.bf16.msra.mxu3 %v336_v35  ;;  %210 = vmatpush.bf16.msrb.mxu0 %v340_v37 }
  0x1d   :  { %401 = vmatpush.bf16.msra.mxu2 %v340_v37 }
  0x1f   :  { %192 = vmatpush.bf16.msra.mxu1 %v328_v41 }
  0x20   :  { %394 = vmatpush.bf16.msra.mxu3 %v328_v41  ;;  %211 = vmatpush.bf16.msrb.mxu0 %v332_v43 }
  0x21   :  { %402 = vmatpush.bf16.msra.mxu2 %v332_v43 }
  0x23   :  { %193 = vmatpush.bf16.msra.mxu1 %v320_v47 }
  0x24   :  { %395 = vmatpush.bf16.msra.mxu3 %v320_v47  ;;  %212 = vmatpush.bf16.msrb.mxu0 %v324_v49 }
  0x25   :  { %403 = vmatpush.bf16.msra.mxu2 %v324_v49 }
  0x27   :  { %194 = vmatpush.bf16.msra.mxu1 %v312_v53 }
  0x28   :  { %396 = vmatpush.bf16.msra.mxu3 %v312_v53  ;;  %213 = vmatpush.bf16.msrb.mxu0 %v316_v55 }
  0x29   :  { %404 = vmatpush.bf16.msra.mxu2 %v316_v55 }
  0x88   :  { %v91_v56 = vpop.f32.mrf.mxu0 }
  0x89   :  { %v92_v58 = vadd.f32 %v410_v57, %v91_v56 }
  0x8b   :  { %v101_v61 = vmax.f32 %v92_v58, 0.0  ;;  %v286_v58 = vsel %vm259_vm2, %v283_v51, %v285_v52 }
  0x90   :  { %v93_v59 = vpop.f32.mrf.mxu0 }
  0x91   :  { %v94_v60 = vadd.f32 %v410_v57, %v93_v59 }
  0x93   :  { %v102_v62 = vmax.f32 %v94_v60, 0.0 }
  0x95   :  { %v105_v63 = vpack.c.bf16 %v102_v62, %v101_v61 }
  0x97   :  { %195 = vmatmul.bf16.vlgmr.msra.gmra.mxu1 %v105_v63  ;;  %214 = vmatmul.bf16.vlgmr.msrb.gmra.mxu0 %v105_v63 }
  0x98   :  { %v96_v0 = vpop.f32.mrf.mxu0 }
  0x99   :  { %v97_v1 = vadd.f32 %v410_v57, %v96_v0 }
  0x9b   :  { %v103_v4 = vmax.f32 %v97_v1, 0.0 }
  0xa0   :  { %v98_v2 = vpop.f32.mrf.mxu0 }
  0xa1   :  { %v99_v3 = vadd.f32 %v410_v57, %v98_v2 }
  0xa3   :  { %v104_v5 = vmax.f32 %v99_v3, 0.0 }
  0xa5   :  { %v106_v6 = vpack.c.bf16 %v104_v5, %v103_v4 }
  0xa7   :  { %200 = vmatmul.bf16.vlgmr.msra.gmra.mxu3 %v106_v6  ;;  %219 = vmatmul.bf16.vlgmr.msra.gmra.mxu2 %v106_v6 }
 0x114   :  { %v215_v7 = vpop.f32.mrf.mxu0  ;;  %v196_v8 = vpop.f32.mrf.mxu1 }
 0x11c   :  { %v217_v9 = vpop.f32.mrf.mxu0  ;;  %v198_v12 = vpop.f32.mrf.mxu1 }
 0x11d   :  { %v232_v11 = vmax.f32 %v215_v7, %v217_v9  ;;  %v225_v16 = vmax.f32 %v196_v8, %v198_v12 }
 0x11f   :  { %v233_v13 = vrot.slane %v232_v11, 4  ;;  %v226_v18 = vrot.slane %v225_v16, 4 }
 0x121   :  { %v234_v17 = vmax.f32 %v232_v11, %v233_v13  ;;  %v227_v22 = vmax.f32 %v225_v16, %v226_v18 }
 0x123   :  { %v235_v19 = vrot.slane %v234_v17, 2  ;;  %v228_v28 = vrot.slane %v227_v22, 2 }
 0x125   :  { %v236_v25 = vmax.f32 %v234_v17, %v235_v19  ;;  %v229_v34 = vmax.f32 %v227_v22, %v228_v28 }
 0x127   :  { %v237_v31 = vrot.slane %v236_v25, 1  ;;  %v230_v41 = vrot.slane %v229_v34, 1 }
 0x129   :  { %v238_v37 = vmax.f32 %v236_v25, %v237_v31  ;;  %v231_v47 = vmax.f32 %v229_v34, %v230_v41 }
 0x12a   :  { %v201_v14 = vpop.f32.mrf.mxu3  ;;  %v220_v15 = vpop.f32.mrf.mxu2 }
 0x12b   :  { %v257_v43 = vrot.slane %v238_v37, 6 }
 0x12d   :  { %v260_v50 = vsel %vm259_vm2, %v231_v47, %v257_v43 }
 0x132   :  { %v203_v20 = vpop.f32.mrf.mxu3  ;;  %v222_v21 = vpop.f32.mrf.mxu2 }
 0x133   :  { %v239_v23 = vmax.f32 %v201_v14, %v203_v20  ;;  %v246_v24 = vmax.f32 %v220_v15, %v222_v21 }
 0x135   :  { %v240_v26 = vrot.slane %v239_v23, 4  ;;  %v247_v27 = vrot.slane %v246_v24, 4 }
 0x137   :  { %v241_v29 = vmax.f32 %v239_v23, %v240_v26  ;;  %v248_v30 = vmax.f32 %v246_v24, %v247_v27 }
 0x139   :  { %v242_v32 = vrot.slane %v241_v29, 2  ;;  %v249_v33 = vrot.slane %v248_v30, 2 }
 0x13b   :  { %v243_v35 = vmax.f32 %v241_v29, %v242_v32  ;;  %v250_v36 = vmax.f32 %v248_v30, %v249_v33 }
 0x13d   :  { %v244_v38 = vrot.slane %v243_v35, 1  ;;  %v251_v39 = vrot.slane %v250_v36, 1 }
 0x13f   :  { %v252_v42 = vmax.f32 %v250_v36, %v251_v39  ;;  %v245_v44 = vmax.f32 %v243_v35, %v244_v38 }
 0x141   :  { %v258_v45 = vrot.slane %v252_v42, 6 }
 0x143   :  { %v261_v48 = vsel %vm259_vm2, %v245_v44, %v258_v45 }
 0x144   :  { %v266_v49 = vrot.slane %v261_v48, 7 }
 0x146   :  { %v268_v53 = vsel %vm267_vm3, %v266_v49, %v260_v50 }
 0x147   :  { %v270_v55 = vsel %vm269_vm4, %v266_v49, %v268_v53 }
 0x148   :  { %v272_v56 = vsel %vm271_vm5, %v266_v49, %v270_v55 }
 0x149   :  { %v274_v57 = vsel %vm273_vm6, %v266_v49, %v272_v56 }
 0x14a   :  { %v276_v59 = vmax.f32 %v61_v54, %v274_v57 }
 0x14c   :  { %277 = vst [vmem:[#allocation2] sm:$0xf] %v276_v59  ;;  %v288_v60 = vadd.f32 %v286_v58, %v276_v59 }
 0x14e   :  { %289 = vst [vmem:[#allocation6] sm:$0xf] %v288_v60 }
 0x14f   :  { %300 = dma.vmem_to_hbm [thread:$0]  %s296_s10, 64, %s298_s13, [#allocation5]  }
 0x150   :  { %461 = dma.done.wait [#allocation5], 64  }
 0x151   :  { %462 = vsyncadd [#allocation5], 4294967232 }
 0x152   :  { %305 = vsyncpa [#allocation4], 1 }
 0x153   :  { %306 = vsyncpa [#allocation5], 1 }

</bundles_post_ra>
